<compile_context>
chip_gen: v7x
topology: tpu7x:2x2x1
jax: 0.10.0
libtpu: 0.0.40
codegen_flags: <defaults>
</compile_context>

<pallas_src>
import functools

import jax
import jax.numpy as jnp
from jax import lax
from jax.experimental import pallas as pl
from jax.experimental.pallas import tpu as pltpu


# -----------------------------------------------------------------------------
# GroupNorm statistics kernel: per-(batch, channel) scale / shift lane vectors
# -----------------------------------------------------------------------------
def _gn_stats_kernel(x_ref, g_ref, b_ref, sc_ref, sh_ref, *, G, eps):
    x = x_ref[0].astype(jnp.float32)                      # (HW, C)
    HW, C = x.shape
    Cg = C // G

    # Per-channel sums (sublane reduction), folded into groups with tiny 0/1
    # membership matmuls so the lane dimension is never reshaped.
    s1 = jnp.sum(x, axis=0, keepdims=True)                # (1, C)
    s2 = jnp.sum(x * x, axis=0, keepdims=True)            # (1, C)
    c2g = (lax.broadcasted_iota(jnp.int32, (C, G), 0) // Cg ==
           lax.broadcasted_iota(jnp.int32, (C, G), 1)).astype(jnp.float32)
    g2c = (lax.broadcasted_iota(jnp.int32, (G, C), 1) // Cg ==
           lax.broadcasted_iota(jnp.int32, (G, C), 0)).astype(jnp.float32)

    n = float(HW * Cg)
    mean_g = jnp.dot(s1, c2g, preferred_element_type=jnp.float32) / n   # (1,G)
    ex2_g = jnp.dot(s2, c2g, preferred_element_type=jnp.float32) / n
    var_g = ex2_g - mean_g * mean_g        # biased variance (matches torch GN)
    inv_g = lax.rsqrt(var_g + eps)

    mean_c = jnp.dot(mean_g, g2c, preferred_element_type=jnp.float32)   # (1,C)
    inv_c = jnp.dot(inv_g, g2c, preferred_element_type=jnp.float32)

    scale = g_ref[...] * inv_c                             # gamma / std
    sc_ref[0] = scale
    sh_ref[0] = b_ref[...] - mean_c * scale                # beta - mean*scale


@functools.lru_cache(maxsize=None)
def _build_gn_stats(B, HW, C, G, eps):
    kernel = functools.partial(_gn_stats_kernel, G=G, eps=eps)
    f = pl.pallas_call(
        kernel,
        out_shape=(jax.ShapeDtypeStruct((B, 1, C), jnp.float32),
                   jax.ShapeDtypeStruct((B, 1, C), jnp.float32)),
        grid_spec=pltpu.PrefetchScalarGridSpec(
            num_scalar_prefetch=0,
            grid=(B,),
            in_specs=[pl.BlockSpec((1, HW, C), lambda b: (b, 0, 0)),
                      pl.BlockSpec((1, C), lambda b: (0, 0)),
                      pl.BlockSpec((1, C), lambda b: (0, 0))],
            out_specs=[pl.BlockSpec((1, 1, C), lambda b: (b, 0, 0)),
                       pl.BlockSpec((1, 1, C), lambda b: (b, 0, 0))]),
        compiler_params=pltpu.CompilerParams(
            dimension_semantics=("parallel",),
            vmem_limit_bytes=48 * 1024 * 1024),
    )
    return jax.jit(f)


def gn_stats(x, gamma, beta, num_groups=32, eps=1e-6):
    """Returns per-(batch, channel) (scale, shift), each (B, 1, C) float32."""
    B, H, W, C = x.shape
    f = _build_gn_stats(B, H * W, C, num_groups, float(eps))
    return f(x.reshape(B, H * W, C),
             gamma.reshape(1, C).astype(jnp.float32),
             beta.reshape(1, C).astype(jnp.float32))


# -----------------------------------------------------------------------------
# Fused GN-apply + SiLU + 3x3 conv kernel (bias and optional residual fused)
# -----------------------------------------------------------------------------
def _gn_silu_conv_kernel(*refs, KH, KW, H, W, TH, Wo, has_res):
    if has_res:
        x_ref, sc_ref, sh_ref, w_ref, b_ref, res_ref, o_ref, xn_ref = refs
    else:
        x_ref, sc_ref, sh_ref, w_ref, b_ref, o_ref, xn_ref = refs
        res_ref = None

    t = pl.program_id(1)
    Cin = x_ref.shape[3]
    Cout = w_ref.shape[2]

    # Normalize + SiLU the whole image once per batch element into the
    # zero-padded VMEM scratch (grid axis t is "arbitrary" and runs in order,
    # so t == 0 always precedes the other strips of the same batch element).
    @pl.when(t == 0)
    def _():
        xn_ref[...] = jnp.zeros_like(xn_ref)               # halo = conv padding
        xv = x_ref[0].astype(jnp.float32)                  # (H, W, Cin)
        xv = xv * sc_ref[0] + sh_ref[0]                    # GN affine
        xv = xv * jax.nn.sigmoid(xv)                       # SiLU (EUP)
        xn_ref[pl.ds(1, H), pl.ds(1, W), :] = xv.astype(xn_ref.dtype)

    row0 = pl.multiple_of(t * TH, TH)                      # first output row

    # KW taps merged into the contraction dim: per kh, one (TH*Wo, KW*Cin)
    # patch and one K=KW*Cin matmul into an f32 accumulator.
    acc = None
    for kh in range(KH):
        strip = xn_ref[pl.ds(row0 + kh, TH), :, :]         # (TH, W+2, Cin)
        patch = jnp.concatenate(
            [strip[:, kw:kw + Wo, :] for kw in range(KW)], axis=-1)
        patch = patch.reshape(TH * Wo, KW * Cin)
        contrib = jnp.dot(patch, w_ref[kh],
                          preferred_element_type=jnp.float32)
        acc = contrib if acc is None else acc + contrib

    # Epilogue: bias (+ residual) fused, single store of the output tile.
    y = acc + b_ref[...]                                   # (TH*Wo, Cout)
    y = y.reshape(TH, Wo, Cout)
    if has_res:
        y = y + res_ref[0].astype(jnp.float32)
    o_ref[0] = y.astype(o_ref.dtype)


def _pick_tile_h(Ho, Wo, max_rows=512):
    """Largest divisor of Ho with TH*Wo <= max_rows (MXU-friendly M tile)."""
    # TODO(synk): add a remainder-handling path for Ho with no good divisor.
    best = 1
    for th in range(1, Ho + 1):
        if Ho % th == 0 and th * Wo <= max_rows:
            best = th
    return best


@functools.lru_cache(maxsize=None)
def _build_gn_conv(B, H, W, Cin, KH, KW, Cout, TH, n_th, has_res, out_dtype):
    kernel = functools.partial(_gn_silu_conv_kernel, KH=KH, KW=KW, H=H, W=W,
                               TH=TH, Wo=W, has_res=has_res)
    in_specs = [
        # Unpadded NHWC image: index map ignores the row-tile axis, so the DMA
        # happens only when the batch index changes (block re-use across t).
        pl.BlockSpec((1, H, W, Cin), lambda b, t: (b, 0, 0, 0)),
        pl.BlockSpec((1, 1, Cin), lambda b, t: (b, 0, 0)),        # GN scale
        pl.BlockSpec((1, 1, Cin), lambda b, t: (b, 0, 0)),        # GN shift
        # Weight reshaped to (KH, KW*Cin, Cout), resident for the whole grid.
        pl.BlockSpec((KH, KW * Cin, Cout), lambda b, t: (0, 0, 0)),
        pl.BlockSpec((1, Cout), lambda b, t: (0, 0)),             # bias
    ]
    if has_res:
        in_specs.append(
            pl.BlockSpec((1, TH, W, Cout), lambda b, t: (b, t, 0, 0)))

    f = pl.pallas_call(
        kernel,
        out_shape=jax.ShapeDtypeStruct((B, H, W, Cout), out_dtype),
        grid_spec=pltpu.PrefetchScalarGridSpec(
            num_scalar_prefetch=0,
            grid=(B, n_th),
            in_specs=in_specs,
            out_specs=pl.BlockSpec((1, TH, W, Cout), lambda b, t: (b, t, 0, 0)),
            # Zero-padded, normalized bf16 image (carries state across t).
            scratch_shapes=[pltpu.VMEM((H + 2, W + 2, Cin), jnp.bfloat16)]),
        compiler_params=pltpu.CompilerParams(
            dimension_semantics=("parallel", "arbitrary"),
            vmem_limit_bytes=48 * 1024 * 1024),
    )
    return jax.jit(f)


def gn_silu_conv3x3(x, scale, shift, w, b, res=None, out_dtype=jnp.bfloat16):
    """Fused GroupNorm-apply + SiLU + 3x3 stride-1 pad-1 conv (+ residual)."""
    B, H, W, Cin = x.shape
    KH, KW, Cin2, Cout = w.shape
    assert Cin == Cin2 and KH == 3 and KW == 3
    TH = _pick_tile_h(H, W)
    n_th = H // TH

    args = [x.astype(jnp.bfloat16), scale, shift,
            w.reshape(KH, KW * Cin, Cout).astype(jnp.bfloat16),
            b.reshape(1, Cout).astype(jnp.float32)]
    if res is not None:
        args.append(res.astype(jnp.bfloat16))
    f = _build_gn_conv(B, H, W, Cin, KH, KW, Cout, TH, n_th,
                       res is not None, out_dtype)
    return f(*args)


# -----------------------------------------------------------------------------
# 1x1 residual conv (only when dim_in != dim_out), bf16 output
# -----------------------------------------------------------------------------
def _conv1x1_kernel(x_ref, w_ref, b_ref, o_ref):
    th, wo, cin = x_ref.shape[1], x_ref.shape[2], x_ref.shape[3]
    cout = w_ref.shape[1]
    x = x_ref[0].reshape(th * wo, cin)
    y = jnp.dot(x, w_ref[...], preferred_element_type=jnp.float32) + b_ref[...]
    o_ref[0] = y.reshape(th, wo, cout).astype(o_ref.dtype)


@functools.lru_cache(maxsize=None)
def _build_conv1x1(B, H, W, Cin, Cout, TH, n_th, out_dtype):
    f = pl.pallas_call(
        _conv1x1_kernel,
        out_shape=jax.ShapeDtypeStruct((B, H, W, Cout), out_dtype),
        grid_spec=pltpu.PrefetchScalarGridSpec(
            num_scalar_prefetch=0,
            grid=(B, n_th),
            in_specs=[pl.BlockSpec((1, TH, W, Cin), lambda b, t: (b, t, 0, 0)),
                      pl.BlockSpec((Cin, Cout), lambda b, t: (0, 0)),
                      pl.BlockSpec((1, Cout), lambda b, t: (0, 0))],
            out_specs=pl.BlockSpec((1, TH, W, Cout), lambda b, t: (b, t, 0, 0))),
        compiler_params=pltpu.CompilerParams(
            dimension_semantics=("parallel", "parallel"),
            vmem_limit_bytes=48 * 1024 * 1024),
    )
    return jax.jit(f)


def conv1x1(x, w, b, out_dtype=jnp.bfloat16):
    B, H, W, Cin = x.shape
    _, _, Cin2, Cout = w.shape
    assert Cin == Cin2
    TH = _pick_tile_h(H, W)
    f = _build_conv1x1(B, H, W, Cin, Cout, TH, H // TH, out_dtype)
    return f(x.astype(jnp.bfloat16),
             w.reshape(Cin, Cout).astype(jnp.bfloat16),
             b.reshape(1, Cout).astype(jnp.float32))


# -----------------------------------------------------------------------------
# Resnet block forward (matches the PyTorch reference semantics)
# -----------------------------------------------------------------------------
def resnet_fwd(p, x):
    # x: (B, H, W, Cin) bf16, NHWC
    if p['res'] is not None:
        res = conv1x1(x, p['res']['w'], p['res']['b'])               # bf16
    else:
        res = x                                                      # bf16
    s1, t1 = gn_stats(x, p['gn1']['g'], p['gn1']['b'])
    h = gn_silu_conv3x3(x, s1, t1, p['conv1']['w'], p['conv1']['b'],
                        out_dtype=jnp.bfloat16)                      # bf16 out
    s2, t2 = gn_stats(h, p['gn2']['g'], p['gn2']['b'])
    # residual add fused into the last conv's epilogue; f32 final output
    return gn_silu_conv3x3(h, s2, t2, p['conv2']['w'], p['conv2']['b'],
                           res=res, out_dtype=jnp.float32)


def resnet_forward(params, x_nchw):
    # bf16 boundary transpose (halves the HBM traffic of the layout change)
    x = jnp.transpose(x_nchw.astype(jnp.bfloat16), (0, 2, 3, 1))
    y = resnet_fwd(params, x)                                        # f32 NHWC
    return jnp.transpose(y, (0, 3, 1, 2))


# -----------------------------------------------------------------------------
# Deterministic synthetic parameters (no checkpoint loading)
# -----------------------------------------------------------------------------
def init_resnet(key, dim_in, dim_out):
    ks = jax.random.split(key, 5)

    def conv_p(k, cin, cout, ksz):
        return {'w': 0.02 * jax.random.normal(k, (ksz, ksz, cin, cout),
                                              jnp.float32),
                'b': 0.01 * jax.random.normal(jax.random.fold_in(k, 1),
                                              (cout,), jnp.float32)}

    def gn_p(k, c):
        return {'g': 1.0 + 0.05 * jax.random.normal(k, (c,), jnp.float32),
                'b': 0.05 * jax.random.normal(jax.random.fold_in(k, 1),
                                              (c,), jnp.float32)}

    p = {'gn1': gn_p(ks[0], dim_in),
         'conv1': conv_p(ks[1], dim_in, dim_out, 3),
         'gn2': gn_p(ks[2], dim_out),
         'conv2': conv_p(ks[3], dim_out, dim_out, 3),
         'res': None}
    if dim_in != dim_out:
        p['res'] = conv_p(ks[4], dim_in, dim_out, 1)
    return p


# -----------------------------------------------------------------------------
# Pure-JAX f32 reference (for a loose numerical sanity check)
# -----------------------------------------------------------------------------
def _silu(x):
    return x * jax.nn.sigmoid(x)


def _gn_ref(x, g, b, G=32, eps=1e-6):
    B, H, W, C = x.shape
    xg = x.reshape(B, H * W, G, C // G)
    mean = xg.mean(axis=(1, 3), keepdims=True)
    var = jnp.square(xg - mean).mean(axis=(1, 3), keepdims=True)
    y = (xg - mean) * lax.rsqrt(var + eps)
    return y.reshape(B, H, W, C) * g + b


def _conv_ref(x, w, b, padding):
    y = lax.conv_general_dilated(
        x, w, window_strides=(1, 1),
        padding=[(padding, padding)] * 2,
        dimension_numbers=('NHWC', 'HWIO', 'NHWC'),
        precision=lax.Precision.HIGHEST)
    return y + b


def resnet_ref(p, x):
    res = x if p['res'] is None else _conv_ref(x, p['res']['w'],
                                               p['res']['b'], 0)
    h = _silu(_gn_ref(x, p['gn1']['g'], p['gn1']['b']))
    h = _conv_ref(h, p['conv1']['w'], p['conv1']['b'], 1)
    h = _silu(_gn_ref(h, p['gn2']['g'], p['gn2']['b']))
    h = _conv_ref(h, p['conv2']['w'], p['conv2']['b'], 1)
    return res + h


# -----------------------------------------------------------------------------
if __name__ == "__main__":
    root = jax.random.PRNGKey(0)
    k_x, k_p1, k_p2 = jax.random.split(root, 3)
    B, H, W = 2, 16, 16

    configs = [(128, 256, k_p1),   # dim_in != dim_out -> 1x1 residual conv path
               (128, 128, k_p2)]   # dim_in == dim_out -> identity residual
    for dim_in, dim_out, kp in configs:
        x_nchw = jax.random.normal(k_x, (B, dim_in, H, W), jnp.float32)
        params = init_resnet(kp, dim_in, dim_out)

        y = jax.block_until_ready(resnet_forward(params, x_nchw))
        assert y.shape == (B, dim_out, H, W)
        assert bool(jnp.all(jnp.isfinite(y)))

        # Loose check against the pure-JAX f32 reference (kernels use bf16 MXU
        # operands and bf16 intermediates, so allow a small absolute deviation).
        x_nhwc = jnp.transpose(x_nchw, (0, 2, 3, 1))
        ref = jnp.transpose(resnet_ref(params, x_nhwc), (0, 3, 1, 2))
        err = float(jnp.max(jnp.abs(y - ref)))
        assert err < 1e-1, f"max abs error too large: {err}"

    print("KERNEL_OK")
</pallas_src>

<mosaic_0001>
module attributes {stable_mosaic.version = 11 : i64} {
  func.func @_conv1x1_kernel(%arg0: i32, %arg1: i32, %arg2: memref<1x16x16x128xbf16, #tpu.memory_space<vmem>>, %arg3: memref<128x256xbf16, #tpu.memory_space<vmem>>, %arg4: memref<1x256xf32, #tpu.memory_space<vmem>>, %arg5: memref<1x16x16x256xbf16, #tpu.memory_space<vmem>>) attributes {dimension_semantics = [#tpu.dimension_semantics<parallel>, #tpu.dimension_semantics<parallel>], iteration_bounds = array<i64: 2, 1>, scalar_prefetch = 0 : i64, scratch_operands = 0 : i64, tpu.core_type = #tpu.core_type<tc>, window_params = [{transform_indices = @transform_0, window_bounds = array<i64: 1, 16, 16, 128>}, {pipeline_mode = #tpu.pipeline_mode<synchronous>, transform_indices = @transform_1, window_bounds = array<i64: 128, 256>}, {pipeline_mode = #tpu.pipeline_mode<synchronous>, transform_indices = @transform_2, window_bounds = array<i64: 1, 256>}, {transform_indices = @transform_3, window_bounds = array<i64: 1, 16, 16, 256>}]} {
    %c0 = arith.constant 0 : index
    %c0_0 = arith.constant 0 : index
    %c0_1 = arith.constant 0 : index
    %c0_2 = arith.constant 0 : index
    %0 = vector.load %arg2[%c0, %c0_0, %c0_1, %c0_2] : memref<1x16x16x128xbf16, #tpu.memory_space<vmem>>, vector<1x16x16x128xbf16>
    %1 = vector.shape_cast %0 : vector<1x16x16x128xbf16> to vector<16x16x128xbf16>
    %2 = vector.shape_cast %1 : vector<16x16x128xbf16> to vector<256x128xbf16>
    %c0_3 = arith.constant 0 : index
    %c0_4 = arith.constant 0 : index
    %3 = vector.load %arg3[%c0_3, %c0_4] : memref<128x256xbf16, #tpu.memory_space<vmem>>, vector<128x256xbf16>
    %cst = arith.constant dense<0.000000e+00> : vector<256x256xf32>
    %4 = tpu.matmul %2, %3, %cst {dimension_numbers = #tpu.dot_dimension_numbers<[1], [0], [0], [1], [0, 0, 1, 1], [], []>} : vector<256x128xbf16>, vector<128x256xbf16>, vector<256x256xf32> -> vector<256x256xf32>
    %c0_5 = arith.constant 0 : index
    %c0_6 = arith.constant 0 : index
    %5 = vector.load %arg4[%c0_5, %c0_6] : memref<1x256xf32, #tpu.memory_space<vmem>>, vector<1x256xf32>
    %6 = vector.broadcast %5 : vector<1x256xf32> to vector<256x256xf32>
    %7 = arith.addf %4, %6 : vector<256x256xf32>
    %8 = vector.shape_cast %7 : vector<256x256xf32> to vector<16x16x256xf32>
    %9 = arith.truncf %8 : vector<16x16x256xf32> to vector<16x16x256xbf16>
    %c0_7 = arith.constant 0 : index
    %c0_8 = arith.constant 0 : index
    %c0_9 = arith.constant 0 : index
    %c0_10 = arith.constant 0 : index
    %10 = vector.load %arg5[%c0_7, %c0_8, %c0_9, %c0_10] : memref<1x16x16x256xbf16, #tpu.memory_space<vmem>>, vector<1x16x16x256xbf16>
    %11 = vector.shape_cast %10 : vector<1x16x16x256xbf16> to vector<16x16x256xbf16>
    %12 = vector.shape_cast %9 : vector<16x16x256xbf16> to vector<1x16x16x256xbf16>
    tpu.vector_store %arg5[%c0_7, %c0_8, %c0_9, %c0_10], %12 {strides = array<i32>} : memref<1x16x16x256xbf16, #tpu.memory_space<vmem>>, vector<1x16x16x256xbf16>,
    return
  }
  func.func @transform_0(%arg0: i32, %arg1: i32) -> (i32, i32, i32, i32) {
    %c0_i32 = arith.constant 0 : i32
    %c0_i32_0 = arith.constant 0 : i32
    %c0_i32_1 = arith.constant 0 : i32
    return %arg0, %arg1, %c0_i32, %c0_i32_0 : i32, i32, i32, i32
  }
  func.func @transform_1(%arg0: i32, %arg1: i32) -> (i32, i32) {
    %c0_i32 = arith.constant 0 : i32
    %c0_i32_0 = arith.constant 0 : i32
    %c0_i32_1 = arith.constant 0 : i32
    return %c0_i32, %c0_i32_0 : i32, i32
  }
  func.func @transform_2(%arg0: i32, %arg1: i32) -> (i32, i32) {
    %c0_i32 = arith.constant 0 : i32
    %c0_i32_0 = arith.constant 0 : i32
    %c0_i32_1 = arith.constant 0 : i32
    return %c0_i32, %c0_i32_0 : i32, i32
  }
  func.func @transform_3(%arg0: i32, %arg1: i32) -> (i32, i32, i32, i32) {
    %c0_i32 = arith.constant 0 : i32
    %c0_i32_0 = arith.constant 0 : i32
    %c0_i32_1 = arith.constant 0 : i32
    return %arg0, %arg1, %c0_i32, %c0_i32_0 : i32, i32, i32, i32
  }
}

</mosaic_0001>

<bundles_post_ra>
// kernel: tpu_custom_call.1
= control target key start
LH: loop header
LB: loop body
LE: loop exit
PB: predicated region body
PF: predicated region fallthrough
CT: control target
= control target key end

     0   :  { %8 = vsyncpa [#allocation3], 0  ;;  %s1780_s0 = inlined_call_operand.hbm [shape: bf16[2,16,16,128], index: 0, kind: input, shape index: {}]   ;;  %s1781_s1 = inlined_call_operand.hbm [shape: bf16[128,256], index: 1, kind: input, shape index: {}]   ;;  %s1782_s2 = inlined_call_operand.vmem [shape: f32[1,256], index: 2, kind: input, shape index: {}]   ;;  %s1783_s3 = inlined_call_operand.hbm [shape: bf16[2,16,16,256], index: 3, kind: output, shape index: {}]  }
   0x1   :  { %10 = vsyncpa [#allocation3 + $0x1], 0 }
   0x2   :  { %11 = vsyncpa [#allocation6], 0 }
   0x3   :  { %12 = vsyncpa [#allocation4], 0 }
   0x4   :  { %14 = vsyncpa [#allocation4 + $0x1], 0  ;;  %s1420_s12 = smov 0   ;;  %s1422_s13 = smov 0  }
   0x5   :  { %s1424_s14 = smov 0   ;;  %s1426_s15 = smov 0  }
   0x6   :  { %s1428_s16 = smov 0   ;;  %s1430_s17 = smov 0  }
   0x7 LB: > { %s993_s18 = sadd.s32 4294967295, %s1388_s17   ;;  %s994_s19 = sadd.s32 4294967294, %s1388_s17   ;;  %s1388_s17 = sphi %s1430_s17, %s20_s17   ;;  %s1384_s16 = sphi %s1428_s16, %s1807_s16   ;;  %s1380_s15 = sphi %s1426_s15, %s1806_s15   ;;  %s1376_s14 = sphi %s1424_s14, %s1805_s14   ;;  %s1372_s13 = sphi %s1422_s13, %s1804_s13   ;;  %s1368_s12 = sphi %s1420_s12, %s1803_s12  }
   0x8   : > { %p54_p0 = scmp.ne.s32.totalorder %s1372_s13, %s1368_s12  ;;  %p1454_p1 = scmp.eq.s32.totalorder %s993_s18, 0 }
   0x9   : > { %p1458_p2 = scmp.eq.s32.totalorder %s993_s18, 1  ;;  %p128_p3 = scmp.eq.s32.totalorder %s994_s19, 1 }
   0xa   : > { %s1788_s20 = scalar_select %p1454_p1, 1, 0 }
   0xb   : > { %s1789_s21 = scalar_select %p1458_p2, 1, 0 }
   0xc   : > { %p1464_p4 = por %p1454_p1, %p54_p0  ;;  %p995_p5 = scmp.ge.s32.totalorder %s1388_s17, 1 }
   0xd   : > { %p1469_p6 = por %p128_p3, %p54_p0  ;;  %p135_p7 = scmp.lt.s32.totalorder %s1388_s17, 3 }
   0xe   : > { %s1790_s22 = scalar_select %p1464_p4, 1, 0 }
   0xf   : > { %s1791_s23 = scalar_select %p1469_p6, 1, 0 }
  0x10   : > { %p1474_p8 = pnand %p995_p5, %p135_p7  ;;  %s1390_s25 = smov [#allocation5]  }
  0x11   : > { %s147_s26 = sshll.u32 %s1390_s25, 4  ;;  %s32_s28 = sadd.s32 1, %s1384_s16  ;;  %s148_s26 = int_to_ptr.vmem [resolvable:$true] %s147_s26 }
  0x12   : > { %s1792_s24 = scalar_select %p1474_p8, 1, 0 }
  0x13   : > { %p1132_p9 = pneg %p1474_p8  ;;  %s1244_s4 = scalar_lea.hbm %s1781_s1, 2048 }
  0x14   : > { %p1245_p12 = scmp.ne.s32.totalorder %s1781_s1, %s1244_s4  ;;  %p1251_p5 = scmp.lt.u32.totalorder %s1244_s4, %s1781_s1 }
  0x15   : > { %p1483_p11 = pnand %p1132_p9, %p1454_p1 }
  0x17   : > { %p1246_p13 = pneg %p1483_p11 }
  0x19   : > { %p1247_p0 = pnand %p1246_p13, %p1245_p12 }
  0x1b   : > { %p1248_p3 = pneg %p1247_p0 }
  0x1d   : > { %p1253_p7 = pnand %p1251_p5, %p1248_p3 }
  0x1f   : > { %1256 = shalt.err (!%p1253_p7)
}
  0x20   : > { %s1257_s9 = scalar_lea.vmem %s148_s26, 2048  ;;  %p1265_p1 = scmp.lt.s32.totalorder %s148_s26, %s148_s26 }
  0x21   : > { %p1258_p9 = scmp.ne.s32.totalorder %s148_s26, %s1257_s9  ;;  %p1266_p4 = scmp.lt.s32.totalorder %s1257_s9, %s1257_s9 }
  0x23   : > { %p1260_p10 = pnand %p1258_p9, %p1246_p13  ;;  %p1267_p8 = por %p1266_p4, %p1265_p1 }
  0x25   : > { %p1261_p6 = pneg %p1260_p10 }
  0x27   : > { %p1268_p2 = pnand %p1267_p8, %p1261_p6 }
  0x29   : > { %1271 = shalt.err (!%p1268_p2)
}
  0x2a   : > { %s1391_s10 = smov 128   ;;  %s1392_s11 = smov 8  }
  0x2b   : > { %1135 = dma.hbm_to_vmem [thread:$0]  (!%p1483_p11), %s1781_s1, 2048, %s148_s26, [#allocation6], %s1391_s10, %s1391_s10, %s1392_s11  }
  0x2c   : > { %p34_p1 = scmp.ge.s32.totalorder %s32_s28, 2  ;;  %s41_s25 = sadd.s32 1, %s1376_s14 }
  0x2d   : > { %p48_p2 = scmp.ne.s32.totalorder %s1376_s14, %s1372_s13  ;;  %p49_p4 = scmp.eq.s32.totalorder %s1388_s17, 0 }
  0x2e   : > { %s1809_s28 = smov (%p34_p1, %s32_s28), 0  ;;  %p1795_p8 = scmp.ne.s32.totalorder %s1789_s21, 0 }
  0x2f   : > { %p1510_p6 = por %p49_p4, %p48_p2  ;;  %s36_s27 = ssub.s32 %s1384_s16, %s1809_s28 }
  0x30   : > { %p1516_p10 = por %p1795_p8, %p48_p2  ;;  %p1145_p12 = scmp.lt.s32.totalorder %s1388_s17, 2 }
  0x31   : > { %p39_p11 = scmp.eq.s32.totalorder %s36_s27, 0  ;;  %s164_s26 = sand.u32 1, %s1376_s14  }
  0x32   : > { %s998_s4 = sshll.u32 %s164_s26, 7  ;;  %s1074_s6 = sshll.u32 %s1384_s16, 11 }
  0x33   : > { %s1525_s5 = scalar_select %p39_p11, %s1376_s14, %s41_s25  }
  0x34   : > { %s1531_s9 = scalar_lea.hbm %s1780_s0, %s1074_s6  ;;  %s168_s21 = scalar_lea.vmem [#allocation2], %s998_s4 }
  0x35   : > { %s178_s10 = sshll.u32 %s168_s21, 4  ;;  %p1537_p13 = pnand %p1145_p12, %p1510_p6  ;;  %s1533_s10 = int_to_ptr.vmem [resolvable:$true] %s178_s10 }
  0x36   : > { %s1541_s18 = scalar_lea.sflag [#allocation3], %s164_s26  ;;  %s1272_s19 = scalar_lea.hbm %s1531_s9, 2048 }
  0x37   : > { %p1273_p0 = scmp.ne.s32.totalorder %s1531_s9, %s1272_s19  ;;  %p1274_p3 = pneg %p1537_p13 }
  0x38   : > { %s1277_s29 = scalar_lea.hbm %s1780_s0, 4096  ;;  %p1278_p9 = scmp.lt.u32.totalorder %s1531_s9, %s1780_s0 }
  0x39   : > { %p1275_p5 = pnand %p1274_p3, %p1273_p0  ;;  %p1279_p1 = scmp.lt.u32.totalorder %s1277_s29, %s1272_s19 }
  0x3a   : > { %p1281_p4 = scmp.lt.u32.totalorder %s1272_s19, %s1531_s9 }
  0x3b   : > { %p1276_p7 = pneg %p1275_p5  ;;  %p1280_p2 = por %p1279_p1, %p1278_p9 }
  0x3d   : > { %p1282_p6 = por %p1281_p4, %p1280_p2 }
  0x3f   : > { %p1283_p8 = pnand %p1282_p6, %p1276_p7 }
  0x41   : > { %1286 = shalt.err (!%p1283_p8)
}
  0x42   : > { %s1287_s26 = scalar_lea.vmem %s1533_s10, 2048  ;;  %s1393_s7 = smov [#allocation2]  }
  0x43   : > { %p1288_p12 = scmp.ne.s32.totalorder %s1533_s10, %s1287_s26  ;;  %s1292_s8 = sshll.u32 %s1393_s7, 4  ;;  %s1293_s8 = int_to_ptr.vmem [resolvable:$false] %s1292_s8 }
  0x44   : > { %s1294_s21 = scalar_lea.vmem %s1293_s8, 4096  ;;  %p1295_p5 = scmp.lt.s32.totalorder %s1533_s10, %s1293_s8 }
  0x45   : > { %p1290_p11 = pnand %p1288_p12, %p1274_p3  ;;  %p1296_p9 = scmp.lt.s32.totalorder %s1294_s21, %s1287_s26 }
  0x47   : > { %p1291_p0 = pneg %p1290_p11  ;;  %p1297_p1 = por %p1296_p9, %p1295_p5 }
  0x49   : > { %p1298_p2 = pnand %p1297_p1, %p1291_p0 }
  0x4b   : > { %1301 = shalt.err (!%p1298_p2)
}
  0x4c   : > { %s1394_s19 = smov 64   ;;  %s1395_s25 = smov 4  }
  0x4d   : > { %1139 = dma.hbm_to_vmem [thread:$0]  (!%p1537_p13), %s1531_s9, 2048, %s1533_s10, %s1541_s18, %s1394_s19, %s1394_s19, %s1395_s25  }
  0x4e   : > { %p1798_p3 = scmp.ne.s32.totalorder %s1792_s24, 0 }
  0x4f   : > { %s1572_s27 = sand.u32 (!%p1798_p3), 1, %s1372_s13   ;;  %p1799_p7 = scmp.ne.s32.totalorder (!%p1798_p3), %s1790_s22, 0 }
  0x50   : > { %190 = sbr.rel (%p1798_p3) target bundleno = 415 (0x19f), region = 32  ;;  %s1002_s29 = sshll.u32 (!%p1798_p3), %s1572_s27, 7 }
  0x51   : > { %s193_s4 = scalar_lea.sflag (!%p1798_p3), [#allocation3], %s1572_s27  ;;  %s1576_s6 = scalar_lea.vmem (!%p1798_p3), [#allocation2], %s1002_s29 }
  0x57   : > { %1355 = dma.done.wait (%p1799_p7), %s193_s4, 2048  }
  0x58   : > { %1357 = vsyncadd (%p1799_p7), %s193_s4, 4294965248  ;;  %p1800_p13 = scmp.ne.s32.totalorder %s1788_s20, 0 }
  0x5a   : > { %1359 = dma.done.wait (%p1800_p13), [#allocation6], 2048  }
  0x5b   : > { %1361 = vsyncadd (%p1800_p13), [#allocation6], 4294965248  ;;  %v1396_v0 = vmov 0   ;;  %v1204_v1 = vld [vmem:[#allocation5 + $0x4] ss:$8 sps:$4 sm:$0xff]   ;;  %v1232_v21 = vld [vmem:[%s1576_s6 + $0x10] sm:$0xff]   ;;  %v276_v33 = vlaneseq }
  0x5c   : > { %494 = vmatprep.mubr.bf16.mxu0 %v1396_v0  ;;  %574 = vmatprep.mubr.bf16.mxu1 %v1396_v0  ;;  %v1206_v2 = vld [vmem:[#allocation5] ss:$8 sps:$4 sm:$0xff]   ;;  %v1207_v3 = vld [vmem:[#allocation5 + $0x14] ss:$8 sps:$4 sm:$0xff]   ;;  %v1209_v4 = vld [vmem:[#allocation5 + $0x10] ss:$8 sps:$4 sm:$0xff]  }
  0x5d   : > { %462 = vmatprep.subr.bf16.mxu0 %v1204_v1  ;;  %1108 = vmatprep.subr.bf16.mxu1 %v1204_v1  ;;  %v1210_v5 = vld [vmem:[#allocation5 + $0x24] ss:$8 sps:$4 sm:$0xff]   ;;  %v1212_v6 = vld [vmem:[#allocation5 + $0x20] ss:$8 sps:$4 sm:$0xff]   ;;  %v1213_v7 = vld [vmem:[#allocation5 + $0x34] ss:$8 sps:$4 sm:$0xff]  }
  0x5e   : > { %463 = vmatpush1.bf16.msra.mxu0 %v1206_v2  ;;  %1116 = vmatpush1.bf16.msra.mxu1 %v1206_v2  ;;  %v1215_v8 = vld [vmem:[#allocation5 + $0x30] ss:$8 sps:$4 sm:$0xff]   ;;  %v1216_v9 = vld [vmem:[#allocation5 + $0x44] ss:$8 sps:$4 sm:$0xff]   ;;  %v1218_v10 = vld [vmem:[#allocation5 + $0x40] ss:$8 sps:$4 sm:$0xff]  }
  0x5f   : > { %464 = vmatprep.subr.bf16.mxu0 %v1207_v3  ;;  %1109 = vmatprep.subr.bf16.mxu1 %v1207_v3  ;;  %v1219_v11 = vld [vmem:[#allocation5 + $0x54] ss:$8 sps:$4 sm:$0xff]   ;;  %v1221_v12 = vld [vmem:[#allocation5 + $0x50] ss:$8 sps:$4 sm:$0xff]   ;;  %v1222_v13 = vld [vmem:[#allocation5 + $0x64] ss:$8 sps:$4 sm:$0xff]  }
  0x60   : > { %v1224_v14 = vld [vmem:[#allocation5 + $0x60] ss:$8 sps:$4 sm:$0xff]   ;;  %v1225_v15 = vld [vmem:[#allocation5 + $0x74] ss:$8 sps:$4 sm:$0xff]   ;;  %v1227_v16 = vld [vmem:[#allocation5 + $0x70] ss:$8 sps:$4 sm:$0xff]  }
  0x61   : > { %v1228_v17 = vld [vmem:[%s1576_s6] sm:$0xff]   ;;  %v1230_v19 = vld [vmem:[%s1576_s6 + $0x8] sm:$0xff]   ;;  %v1233_v22 = vld [vmem:[%s1576_s6 + $0x50] sm:$0xff]   ;;  %v277_v34 = vshrl.u32 %v276_v33, 7  ;;  %s1004_s24 = sshll.u32 %s1572_s27, 8  ;;  %s1107_s10 = sshll.u32 %s1380_s15, 12 }
  0x62   : > { %465 = vmatpush1.bf16.msra.mxu0 %v1209_v4  ;;  %1117 = vmatpush1.bf16.msra.mxu1 %v1209_v4  ;;  %v1229_v18 = vld [vmem:[%s1576_s6 + $0x40] sm:$0xff]   ;;  %v1231_v20 = vld [vmem:[%s1576_s6 + $0x48] sm:$0xff]   ;;  %v1234_v23 = vld [vmem:[%s1576_s6 + $0x18] sm:$0xff]   ;;  %s1634_s9 = scalar_lea.vmem [#allocation7], %s1004_s24  ;;  %s1725_s15 = scalar_lea.hbm %s1783_s3, %s1107_s10 }
  0x63   : > { %466 = vmatprep.subr.bf16.mxu0 %v1210_v5  ;;  %1110 = vmatprep.subr.bf16.mxu1 %v1210_v5  ;;  %v1235_v24 = vld [vmem:[%s1576_s6 + $0x58] sm:$0xff]   ;;  %v1236_v25 = vld [vmem:[%s1576_s6 + $0x20] sm:$0xff]   ;;  %v1238_v27 = vld [vmem:[%s1576_s6 + $0x28] sm:$0xff]   ;;  %v278_v35 = vsub.s32 0, %v277_v34  ;;  %v282_v37 = vsub.s32 1, %v277_v34  ;;  %s896_s11 = sshll.u32 %s1634_s9, 4  ;;  %s1727_s11 = int_to_ptr.vmem [resolvable:$true] %s896_s11 }
  0x64   : > { %v1237_v26 = vld [vmem:[%s1576_s6 + $0x60] sm:$0xff]   ;;  %v1239_v28 = vld [vmem:[%s1576_s6 + $0x68] sm:$0xff]   ;;  %v1240_v29 = vld [vmem:[%s1576_s6 + $0x30] sm:$0xff]   ;;  %s880_s7 = scalar_lea.sflag [#allocation4], %s1572_s27  ;;  %s1302_s8 = scalar_lea.vmem %s1727_s11, 4096 }
  0x65   : > { %v1241_v30 = vld [vmem:[%s1576_s6 + $0x70] sm:$0xff]   ;;  %v1242_v31 = vld [vmem:[%s1576_s6 + $0x38] sm:$0xff]   ;;  %v274_v36 = vld [vmem:[%s1782_s2] sm:$0x3]  ;;  %p1303_p4 = scmp.ne.s32.totalorder %s1727_s11, %s1302_s8  ;;  %s1397_s21 = smov [#allocation7]  }
  0x66   : > { %467 = vmatpush1.bf16.msra.mxu0 %v1212_v6  ;;  %1118 = vmatpush1.bf16.msra.mxu1 %v1212_v6  ;;  %v1243_v32 = vld [vmem:[%s1576_s6 + $0x78] sm:$0xff]   ;;  %v1621_v38 = vrot.slane %v274_v36, %v278_v35  ;;  %v1623_v39 = vrot.slane %v274_v36, %v282_v37  ;;  %s1306_s19 = sshll.u32 %s1397_s21, 4  ;;  %s1307_s19 = int_to_ptr.vmem [resolvable:$false] %s1306_s19 }
  0x67   : > { %468 = vmatprep.subr.bf16.mxu0 %v1213_v7  ;;  %1111 = vmatprep.subr.bf16.mxu1 %v1213_v7  ;;  %p1304_p6 = pnand %p1303_p4, %p1516_p10  ;;  %s1308_s25 = scalar_lea.vmem %s1307_s19, 8192 }
  0x68   : > { %p1309_p12 = scmp.lt.s32.totalorder %s1727_s11, %s1307_s19  ;;  %p1310_p11 = scmp.lt.s32.totalorder %s1308_s25, %s1302_s8 }
  0x69   : > { %p1305_p8 = pneg %p1304_p6 }
  0x6a   : > { %469 = vmatpush1.bf16.msra.mxu0 %v1215_v8  ;;  %1119 = vmatpush1.bf16.msra.mxu1 %v1215_v8  ;;  %p1311_p0 = por %p1310_p11, %p1309_p12 }
  0x6b   : > { %470 = vmatprep.subr.bf16.mxu0 %v1216_v9  ;;  %1112 = vmatprep.subr.bf16.mxu1 %v1216_v9 }
  0x6c   : > { %p1312_p5 = pnand %p1311_p0, %p1305_p8 }
  0x6e   : > { %471 = vmatpush1.bf16.msra.mxu0 %v1218_v10  ;;  %1120 = vmatpush1.bf16.msra.mxu1 %v1218_v10 }
  0x6f   : > { %472 = vmatprep.subr.bf16.mxu0 %v1219_v11  ;;  %1113 = vmatprep.subr.bf16.mxu1 %v1219_v11 }
  0x72   : > { %473 = vmatpush1.bf16.msra.mxu0 %v1221_v12  ;;  %1121 = vmatpush1.bf16.msra.mxu1 %v1221_v12 }
  0x73   : > { %474 = vmatprep.subr.bf16.mxu0 %v1222_v13  ;;  %1114 = vmatprep.subr.bf16.mxu1 %v1222_v13 }
  0x76   : > { %475 = vmatpush1.bf16.msra.mxu0 %v1224_v14  ;;  %1122 = vmatpush1.bf16.msra.mxu1 %v1224_v14 }
  0x77   : > { %476 = vmatprep.subr.bf16.mxu0 %v1225_v15  ;;  %1115 = vmatprep.subr.bf16.mxu1 %v1225_v15 }
  0x7a   : > { %477 = vmatpush1.bf16.msra.mxu0 %v1227_v16  ;;  %1123 = vmatpush1.bf16.msra.mxu1 %v1227_v16 }
  0x7d   : > { %495 = vmatmul.mubr.bf16.vlgmr.msra.gmra.mrb[0].mxu0 %v1228_v17  ;;  %575 = vmatmul.mubr.bf16.vlgmr.msra.gmra.mrb[0].mxu1 %v1229_v18 }
  0x7e   : > { %504 = vmatprep.mubr.bf16.mxu0 %v1396_v0  ;;  %584 = vmatprep.mubr.bf16.mxu1 %v1396_v0 }
  0x85   : > { %505 = vmatmul.mubr.bf16.gmra.mrb[4].mxu0 %v1230_v19  ;;  %585 = vmatmul.mubr.bf16.gmra.mrb[4].mxu1 %v1231_v20 }
  0x86   : > { %514 = vmatprep.mubr.bf16.mxu0 %v1396_v0  ;;  %594 = vmatprep.mubr.bf16.mxu1 %v1396_v0 }
  0x8d   : > { %515 = vmatmul.mubr.bf16.gmra.mrb[8].mxu0 %v1232_v21  ;;  %595 = vmatmul.mubr.bf16.gmra.mrb[8].mxu1 %v1233_v22 }
  0x8e   : > { %524 = vmatprep.mubr.bf16.mxu0 %v1396_v0  ;;  %604 = vmatprep.mubr.bf16.mxu1 %v1396_v0 }
  0x95   : > { %525 = vmatmul.mubr.bf16.gmra.mrb[12].mxu0 %v1234_v23  ;;  %605 = vmatmul.mubr.bf16.gmra.mrb[12].mxu1 %v1235_v24 }
  0x96   : > { %534 = vmatprep.mubr.bf16.mxu0 %v1396_v0  ;;  %614 = vmatprep.mubr.bf16.mxu1 %v1396_v0 }
  0x9d   : > { %535 = vmatmul.mubr.bf16.gmra.mrb[16].mxu0 %v1236_v25  ;;  %615 = vmatmul.mubr.bf16.gmra.mrb[16].mxu1 %v1237_v26 }
  0x9e   : > { %544 = vmatprep.mubr.bf16.mxu0 %v1396_v0  ;;  %624 = vmatprep.mubr.bf16.mxu1 %v1396_v0 }
  0xa5   : > { %545 = vmatmul.mubr.bf16.gmra.mrb[20].mxu0 %v1238_v27  ;;  %625 = vmatmul.mubr.bf16.gmra.mrb[20].mxu1 %v1239_v28 }
  0xa6   : > { %554 = vmatprep.mubr.bf16.mxu0 %v1396_v0  ;;  %634 = vmatprep.mubr.bf16.mxu1 %v1396_v0 }
  0xad   : > { %555 = vmatmul.mubr.bf16.gmra.mrb[24].mxu0 %v1240_v29  ;;  %635 = vmatmul.mubr.bf16.gmra.mrb[24].mxu1 %v1241_v30 }
  0xae   : > { %564 = vmatprep.mubr.bf16.mxu0 %v1396_v0  ;;  %644 = vmatprep.mubr.bf16.mxu1 %v1396_v0 }
  0xb5   : > { %565 = vmatmul.mubr.bf16.gmra.mrb[28].mxu0 %v1242_v31  ;;  %645 = vmatmul.mubr.bf16.gmra.mrb[28].mxu1 %v1243_v32 }
 0x150   : > { %v496_v40 = vpop.f32.mrb[0].mxu0  ;;  %v576_v41 = vpop.f32.mrb[0].mxu1 }
 0x151   : > { %v497_v42 = vadd.f32 %v496_v40, %v1621_v38  ;;  %v577_v43 = vadd.f32 %v576_v41, %v1621_v38  ;;  %v498_v44 = vpop.f32.mrb[1].mxu0  ;;  %v578_v45 = vpop.f32.mrb[1].mxu1 }
 0x152   : > { %v499_v46 = vadd.f32 %v498_v44, %v1623_v39  ;;  %v579_v47 = vadd.f32 %v578_v45, %v1623_v39  ;;  %v500_v48 = vpop.f32.mrb[2].mxu0  ;;  %v580_v49 = vpop.f32.mrb[2].mxu1 }
 0x153   : > { %v501_v50 = vadd.f32 %v500_v48, %v1621_v38  ;;  %v581_v51 = vadd.f32 %v580_v49, %v1621_v38  ;;  %v502_v52 = vpop.f32.mrb[3].mxu0  ;;  %v582_v53 = vpop.f32.mrb[3].mxu1 }
 0x154   : > { %v1075_v54 = vpack.c.bf16 %v499_v46, %v497_v42  ;;  %v1091_v55 = vpack.c.bf16 %v579_v47, %v577_v43  ;;  %v503_v56 = vadd.f32 %v502_v52, %v1623_v39  ;;  %v583_v57 = vadd.f32 %v582_v53, %v1623_v39 }
 0x156   : > { %847 = vst [vmem:[%s1634_s9] sm:$0xff] %v1075_v54  ;;  %863 = vst [vmem:[%s1634_s9 + $0x80] sm:$0xff] %v1091_v55  ;;  %v1076_v58 = vpack.c.bf16 %v503_v56, %v501_v50  ;;  %v1092_v59 = vpack.c.bf16 %v583_v57, %v581_v51 }
 0x158   : > { %848 = vst [vmem:[%s1634_s9 + $0x8] sm:$0xff] %v1076_v58  ;;  %864 = vst [vmem:[%s1634_s9 + $0x88] sm:$0xff] %v1092_v59  ;;  %v506_v60 = vpop.f32.mrb[4].mxu0  ;;  %v586_v61 = vpop.f32.mrb[4].mxu1 }
 0x159   : > { %v507_v62 = vadd.f32 %v506_v60, %v1621_v38  ;;  %v587_v63 = vadd.f32 %v586_v61, %v1621_v38  ;;  %v508_v0 = vpop.f32.mrb[5].mxu0  ;;  %v588_v1 = vpop.f32.mrb[5].mxu1 }
 0x15a   : > { %v509_v2 = vadd.f32 %v508_v0, %v1623_v39  ;;  %v589_v3 = vadd.f32 %v588_v1, %v1623_v39  ;;  %v510_v4 = vpop.f32.mrb[6].mxu0  ;;  %v590_v5 = vpop.f32.mrb[6].mxu1 }
 0x15b   : > { %v511_v6 = vadd.f32 %v510_v4, %v1621_v38  ;;  %v591_v7 = vadd.f32 %v590_v5, %v1621_v38  ;;  %v512_v8 = vpop.f32.mrb[7].mxu0  ;;  %v592_v9 = vpop.f32.mrb[7].mxu1 }
 0x15c   : > { %v1077_v10 = vpack.c.bf16 %v509_v2, %v507_v62  ;;  %v1093_v11 = vpack.c.bf16 %v589_v3, %v587_v63  ;;  %v513_v12 = vadd.f32 %v512_v8, %v1623_v39  ;;  %v593_v13 = vadd.f32 %v592_v9, %v1623_v39 }
 0x15e   : > { %849 = vst [vmem:[%s1634_s9 + $0x10] sm:$0xff] %v1077_v10  ;;  %865 = vst [vmem:[%s1634_s9 + $0x90] sm:$0xff] %v1093_v11  ;;  %v1078_v14 = vpack.c.bf16 %v513_v12, %v511_v6  ;;  %v1094_v15 = vpack.c.bf16 %v593_v13, %v591_v7 }
 0x160   : > { %850 = vst [vmem:[%s1634_s9 + $0x18] sm:$0xff] %v1078_v14  ;;  %866 = vst [vmem:[%s1634_s9 + $0x98] sm:$0xff] %v1094_v15  ;;  %v516_v16 = vpop.f32.mrb[8].mxu0  ;;  %v596_v17 = vpop.f32.mrb[8].mxu1 }
 0x161   : > { %v517_v18 = vadd.f32 %v516_v16, %v1621_v38  ;;  %v597_v19 = vadd.f32 %v596_v17, %v1621_v38  ;;  %v518_v20 = vpop.f32.mrb[9].mxu0  ;;  %v598_v21 = vpop.f32.mrb[9].mxu1 }
 0x162   : > { %v519_v22 = vadd.f32 %v518_v20, %v1623_v39  ;;  %v599_v23 = vadd.f32 %v598_v21, %v1623_v39  ;;  %v520_v24 = vpop.f32.mrb[10].mxu0  ;;  %v600_v25 = vpop.f32.mrb[10].mxu1 }
 0x163   : > { %v521_v26 = vadd.f32 %v520_v24, %v1621_v38  ;;  %v601_v27 = vadd.f32 %v600_v25, %v1621_v38  ;;  %v522_v28 = vpop.f32.mrb[11].mxu0  ;;  %v602_v29 = vpop.f32.mrb[11].mxu1 }
 0x164   : > { %v1079_v30 = vpack.c.bf16 %v519_v22, %v517_v18  ;;  %v1095_v31 = vpack.c.bf16 %v599_v23, %v597_v19  ;;  %v523_v32 = vadd.f32 %v522_v28, %v1623_v39  ;;  %v603_v33 = vadd.f32 %v602_v29, %v1623_v39 }
 0x166   : > { %851 = vst [vmem:[%s1634_s9 + $0x20] sm:$0xff] %v1079_v30  ;;  %867 = vst [vmem:[%s1634_s9 + $0xa0] sm:$0xff] %v1095_v31  ;;  %v1080_v34 = vpack.c.bf16 %v523_v32, %v521_v26  ;;  %v1096_v35 = vpack.c.bf16 %v603_v33, %v601_v27 }
 0x168   : > { %852 = vst [vmem:[%s1634_s9 + $0x28] sm:$0xff] %v1080_v34  ;;  %868 = vst [vmem:[%s1634_s9 + $0xa8] sm:$0xff] %v1096_v35  ;;  %v526_v36 = vpop.f32.mrb[12].mxu0  ;;  %v606_v37 = vpop.f32.mrb[12].mxu1 }
 0x169   : > { %v527_v40 = vadd.f32 %v526_v36, %v1621_v38  ;;  %v607_v41 = vadd.f32 %v606_v37, %v1621_v38  ;;  %v528_v42 = vpop.f32.mrb[13].mxu0  ;;  %v608_v43 = vpop.f32.mrb[13].mxu1 }
 0x16a   : > { %v529_v44 = vadd.f32 %v528_v42, %v1623_v39  ;;  %v609_v45 = vadd.f32 %v608_v43, %v1623_v39  ;;  %v530_v46 = vpop.f32.mrb[14].mxu0  ;;  %v610_v47 = vpop.f32.mrb[14].mxu1 }
 0x16b   : > { %v531_v48 = vadd.f32 %v530_v46, %v1621_v38  ;;  %v611_v49 = vadd.f32 %v610_v47, %v1621_v38  ;;  %v532_v50 = vpop.f32.mrb[15].mxu0  ;;  %v612_v51 = vpop.f32.mrb[15].mxu1 }
 0x16c   : > { %v1081_v52 = vpack.c.bf16 %v529_v44, %v527_v40  ;;  %v1097_v53 = vpack.c.bf16 %v609_v45, %v607_v41  ;;  %v533_v54 = vadd.f32 %v532_v50, %v1623_v39  ;;  %v613_v55 = vadd.f32 %v612_v51, %v1623_v39 }
 0x16e   : > { %853 = vst [vmem:[%s1634_s9 + $0x30] sm:$0xff] %v1081_v52  ;;  %869 = vst [vmem:[%s1634_s9 + $0xb0] sm:$0xff] %v1097_v53  ;;  %v1082_v56 = vpack.c.bf16 %v533_v54, %v531_v48  ;;  %v1098_v57 = vpack.c.bf16 %v613_v55, %v611_v49 }
 0x170   : > { %854 = vst [vmem:[%s1634_s9 + $0x38] sm:$0xff] %v1082_v56  ;;  %870 = vst [vmem:[%s1634_s9 + $0xb8] sm:$0xff] %v1098_v57  ;;  %v536_v58 = vpop.f32.mrb[16].mxu0  ;;  %v616_v59 = vpop.f32.mrb[16].mxu1 }
 0x171   : > { %v537_v60 = vadd.f32 %v536_v58, %v1621_v38  ;;  %v617_v61 = vadd.f32 %v616_v59, %v1621_v38  ;;  %v538_v62 = vpop.f32.mrb[17].mxu0  ;;  %v618_v63 = vpop.f32.mrb[17].mxu1 }
 0x172   : > { %v539_v0 = vadd.f32 %v538_v62, %v1623_v39  ;;  %v619_v1 = vadd.f32 %v618_v63, %v1623_v39  ;;  %v540_v2 = vpop.f32.mrb[18].mxu0  ;;  %v620_v3 = vpop.f32.mrb[18].mxu1 }
 0x173   : > { %v541_v4 = vadd.f32 %v540_v2, %v1621_v38  ;;  %v621_v5 = vadd.f32 %v620_v3, %v1621_v38  ;;  %v542_v6 = vpop.f32.mrb[19].mxu0  ;;  %v622_v7 = vpop.f32.mrb[19].mxu1 }
 0x174   : > { %v1083_v8 = vpack.c.bf16 %v539_v0, %v537_v60  ;;  %v1099_v9 = vpack.c.bf16 %v619_v1, %v617_v61  ;;  %v543_v10 = vadd.f32 %v542_v6, %v1623_v39  ;;  %v623_v11 = vadd.f32 %v622_v7, %v1623_v39 }
 0x176   : > { %855 = vst [vmem:[%s1634_s9 + $0x40] sm:$0xff] %v1083_v8  ;;  %871 = vst [vmem:[%s1634_s9 + $0xc0] sm:$0xff] %v1099_v9  ;;  %v1084_v12 = vpack.c.bf16 %v543_v10, %v541_v4  ;;  %v1100_v13 = vpack.c.bf16 %v623_v11, %v621_v5 }
 0x178   : > { %856 = vst [vmem:[%s1634_s9 + $0x48] sm:$0xff] %v1084_v12  ;;  %872 = vst [vmem:[%s1634_s9 + $0xc8] sm:$0xff] %v1100_v13  ;;  %v546_v14 = vpop.f32.mrb[20].mxu0  ;;  %v626_v15 = vpop.f32.mrb[20].mxu1 }
 0x179   : > { %v547_v16 = vadd.f32 %v546_v14, %v1621_v38  ;;  %v627_v17 = vadd.f32 %v626_v15, %v1621_v38  ;;  %v548_v18 = vpop.f32.mrb[21].mxu0  ;;  %v628_v19 = vpop.f32.mrb[21].mxu1 }
 0x17a   : > { %v549_v20 = vadd.f32 %v548_v18, %v1623_v39  ;;  %v629_v21 = vadd.f32 %v628_v19, %v1623_v39  ;;  %v550_v22 = vpop.f32.mrb[22].mxu0  ;;  %v630_v23 = vpop.f32.mrb[22].mxu1 }
 0x17b   : > { %v551_v24 = vadd.f32 %v550_v22, %v1621_v38  ;;  %v631_v25 = vadd.f32 %v630_v23, %v1621_v38  ;;  %v552_v26 = vpop.f32.mrb[23].mxu0  ;;  %v632_v27 = vpop.f32.mrb[23].mxu1 }
 0x17c   : > { %v1085_v28 = vpack.c.bf16 %v549_v20, %v547_v16  ;;  %v1101_v29 = vpack.c.bf16 %v629_v21, %v627_v17  ;;  %v553_v30 = vadd.f32 %v552_v26, %v1623_v39  ;;  %v633_v31 = vadd.f32 %v632_v27, %v1623_v39 }
 0x17e   : > { %857 = vst [vmem:[%s1634_s9 + $0x50] sm:$0xff] %v1085_v28  ;;  %873 = vst [vmem:[%s1634_s9 + $0xd0] sm:$0xff] %v1101_v29  ;;  %v1086_v32 = vpack.c.bf16 %v553_v30, %v551_v24  ;;  %v1102_v33 = vpack.c.bf16 %v633_v31, %v631_v25 }
 0x180   : > { %858 = vst [vmem:[%s1634_s9 + $0x58] sm:$0xff] %v1086_v32  ;;  %874 = vst [vmem:[%s1634_s9 + $0xd8] sm:$0xff] %v1102_v33  ;;  %v556_v34 = vpop.f32.mrb[24].mxu0  ;;  %v636_v35 = vpop.f32.mrb[24].mxu1 }
 0x181   : > { %v557_v36 = vadd.f32 %v556_v34, %v1621_v38  ;;  %v637_v37 = vadd.f32 %v636_v35, %v1621_v38  ;;  %v558_v40 = vpop.f32.mrb[25].mxu0  ;;  %v638_v41 = vpop.f32.mrb[25].mxu1 }
 0x182   : > { %v559_v42 = vadd.f32 %v558_v40, %v1623_v39  ;;  %v639_v43 = vadd.f32 %v638_v41, %v1623_v39  ;;  %v560_v44 = vpop.f32.mrb[26].mxu0  ;;  %v640_v45 = vpop.f32.mrb[26].mxu1 }
 0x183   : > { %v561_v46 = vadd.f32 %v560_v44, %v1621_v38  ;;  %v641_v47 = vadd.f32 %v640_v45, %v1621_v38  ;;  %v562_v48 = vpop.f32.mrb[27].mxu0  ;;  %v642_v49 = vpop.f32.mrb[27].mxu1 }
 0x184   : > { %v1087_v50 = vpack.c.bf16 %v559_v42, %v557_v36  ;;  %v1103_v51 = vpack.c.bf16 %v639_v43, %v637_v37  ;;  %v563_v52 = vadd.f32 %v562_v48, %v1623_v39  ;;  %v643_v53 = vadd.f32 %v642_v49, %v1623_v39 }
 0x186   : > { %859 = vst [vmem:[%s1634_s9 + $0x60] sm:$0xff] %v1087_v50  ;;  %875 = vst [vmem:[%s1634_s9 + $0xe0] sm:$0xff] %v1103_v51  ;;  %v1088_v54 = vpack.c.bf16 %v563_v52, %v561_v46  ;;  %v1104_v55 = vpack.c.bf16 %v643_v53, %v641_v47 }
 0x188   : > { %860 = vst [vmem:[%s1634_s9 + $0x68] sm:$0xff] %v1088_v54  ;;  %876 = vst [vmem:[%s1634_s9 + $0xe8] sm:$0xff] %v1104_v55  ;;  %v566_v56 = vpop.f32.mrb[28].mxu0  ;;  %v646_v57 = vpop.f32.mrb[28].mxu1 }
 0x189   : > { %v567_v58 = vadd.f32 %v566_v56, %v1621_v38  ;;  %v647_v59 = vadd.f32 %v646_v57, %v1621_v38  ;;  %v568_v60 = vpop.f32.mrb[29].mxu0  ;;  %v648_v61 = vpop.f32.mrb[29].mxu1 }
 0x18a   : > { %v569_v62 = vadd.f32 %v568_v60, %v1623_v39  ;;  %v649_v63 = vadd.f32 %v648_v61, %v1623_v39  ;;  %v570_v0 = vpop.f32.mrb[30].mxu0  ;;  %v650_v1 = vpop.f32.mrb[30].mxu1 }
 0x18b   : > { %v571_v2 = vadd.f32 %v570_v0, %v1621_v38  ;;  %v651_v3 = vadd.f32 %v650_v1, %v1621_v38  ;;  %v572_v4 = vpop.f32.mrb[31].mxu0  ;;  %v652_v5 = vpop.f32.mrb[31].mxu1 }
 0x18c   : > { %v1089_v6 = vpack.c.bf16 %v569_v62, %v567_v58  ;;  %v1105_v7 = vpack.c.bf16 %v649_v63, %v647_v59  ;;  %v573_v8 = vadd.f32 %v572_v4, %v1623_v39  ;;  %v653_v9 = vadd.f32 %v652_v5, %v1623_v39 }
 0x18e   : > { %861 = vst [vmem:[%s1634_s9 + $0x70] sm:$0xff] %v1089_v6  ;;  %877 = vst [vmem:[%s1634_s9 + $0xf0] sm:$0xff] %v1105_v7  ;;  %v1090_v38 = vpack.c.bf16 %v573_v8, %v571_v2  ;;  %v1106_v10 = vpack.c.bf16 %v653_v9, %v651_v3 }
 0x190   : > { %862 = vst [vmem:[%s1634_s9 + $0x78] sm:$0xff] %v1090_v38  ;;  %878 = vst [vmem:[%s1634_s9 + $0xf8] sm:$0xff] %v1106_v10 }
 0x191   : > { %1315 = shalt.err (!%p1312_p5)
}
 0x192   : > { %s1316_s29 = scalar_lea.hbm %s1725_s15, 4096  ;;  %s1320_s20 = scalar_lea.hbm %s1783_s3, 8192 }
 0x193   : > { %p1317_p9 = scmp.ne.s32.totalorder %s1725_s15, %s1316_s29  ;;  %p1321_p3 = scmp.lt.u32.totalorder %s1725_s15, %s1783_s3 }
 0x194   : > { %p1322_p7 = scmp.lt.u32.totalorder %s1320_s20, %s1316_s29  ;;  %p1324_p4 = scmp.lt.u32.totalorder %s1316_s29, %s1725_s15 }
 0x195   : > { %p1318_p1 = pnand %p1317_p9, %p1516_p10 }
 0x196   : > { %p1323_p13 = por %p1322_p7, %p1321_p3 }
 0x197   : > { %p1319_p2 = pneg %p1318_p1 }
 0x198   : > { %p1325_p6 = por %p1324_p4, %p1323_p13 }
 0x19a   : > { %p1326_p8 = pnand %p1325_p6, %p1319_p2 }
 0x19c   : > { %1329 = shalt.err (!%p1326_p8)
}
 0x19d   : > { %s1398_s9 = smov 128   ;;  %s1399_s10 = smov 8  }
 0x19e   : > { %1130 = dma.vmem_to_hbm [thread:$0]  (%p1516_p10), %s1727_s11, 4096, %s1725_s15, %s880_s7, %s1398_s9, %s1398_s9, %s1399_s10  }
 0x19f PF: > { %s911_s18 = sand.u32 1, %s1368_s12   ;;  %p1801_p12 = scmp.ne.s32.totalorder %s1791_s23, 0 }
 0x1a0   : > { %p1802_p11 = scmp.ge.s32.totalorder %s1388_s17, 2  ;;  %s912_s26 = scalar_lea.sflag [#allocation4], %s911_s18 }
 0x1a2   : > { %p1141_p0 = pnand %p1802_p11, %p1801_p12 }
 0x1a4   : > { %1363 = dma.done.wait (!%p1141_p0), %s912_s26, 4096  }
 0x1a5   : > { %1365 = vsyncadd (!%p1141_p0), %s912_s26, 4294963200  ;;  %s20_s17 = sadd.s32 1, %s1388_s17   ;;  %s1803_s12 = smov %s1372_s13 }
 0x1a6   : > { %p17_p5 = scmp.ge.s32.totalorder %s20_s17, 4   ;;  %s1804_s13 = smov %s1376_s14 }
 0x1a7   : > { %s1805_s14 = smov %s1525_s5  ;;  %s1806_s15 = smov %s1384_s16 }
 0x1a8   : > { %s1807_s16 = smov %s1809_s28  ;;  %19 = sbr.rel (!%p17_p5) target bundleno = 7 (0x7), region = 81 }
 0x1af   :  { %917 = vsyncpa [#allocation3], 1 }
 0x1b0   :  { %919 = vsyncpa [#allocation3 + $0x1], 1 }
 0x1b1   :  { %920 = vsyncpa [#allocation6], 1 }
 0x1b2   :  { %921 = vsyncpa [#allocation4], 1 }
 0x1b3   :  { %923 = vsyncpa [#allocation4 + $0x1], 1 }

</bundles_post_ra>
